<compile_context>
chip_gen: v5e
topology: v5e:2x2
jax: 0.10.0
libtpu: 0.0.40
codegen_flags: <defaults>
</compile_context>

<pallas_src>
import jax
import jax.numpy as jnp
from jax import lax
from jax.experimental import pallas as pl
from jax.experimental.pallas import tpu as pltpu

# ----------------------------- static config -----------------------------
HIDDEN = 32          # encoder hidden size
MAP_HIDDEN = 32      # map_hidden_size
LABEL_MAX_LEN = 2    # label_max_length  -> slice start = LABEL_MAX_LEN + 2 = 4
TOTAL_SEQ = 12       # encoder sequence length
SEQ = TOTAL_SEQ - (LABEL_MAX_LEN + 2)   # = 8, handshaking sequence length
VOCAB = 50
MAX_TAG = 1          # labels in {0, 1}
NEG_FILL = -10000.0
MAP_PAD = pl.cdiv(3 * MAP_HIDDEN, 128) * 128   # fused (ent|head|tail) width, lane-padded


# ------------------------- Pallas kernel bodies --------------------------
def fused_shaking_map_kernel(seq_ref, wcat_ref, bcat_ref, wmap_ref, bmap_ref, out_ref):
    """Fused 'cat' handshaking + the three map projections for one batch element.

    seq_ref : (1, L, H)          wcat_ref: (H, 2H)   bcat_ref: (1, H)
    wmap_ref: (H, 3M padded)     bmap_ref: (1, 3M padded)
    out_ref : (1, L*L, 3M padded)

    out[0, i*L + j, :] = tanh(seq[i] @ W1 + seq[j] @ W2 + b_cat) @ [W_ent|W_head|W_tail] + b_map
    """
    seq = seq_ref[0]                                                      # (L, H)
    L, H = seq.shape
    # one matmul instead of two: seq @ [W1 | W2] -> (L, 2H), then split
    av = jnp.dot(seq, wcat_ref[...], preferred_element_type=jnp.float32)  # (L, 2H)
    a = av[:, :H] + bcat_ref[...]       # repeat-hidden contribution (+ combine_fc bias)
    v = av[:, H:]                       # visible-hidden contribution
    shaking = jnp.tanh(a[:, None, :] + v[None, :, :])                     # (L, L, H)
    flat = shaking.reshape(L * L, H)                                      # (L*L, H)
    # fused ent/head/tail projection, 128-lane-dense output store
    out_ref[0] = (
        jnp.dot(flat, wmap_ref[...], preferred_element_type=jnp.float32)
        + bmap_ref[...]
    )


def fused_nearest_dist_kernel(tag_ref, s_ref, q_ref, o_ref):
    """Nearest-prototype dot-product distance for one (name, query-sample) grid point.

    tag_ref: (1, 1, Ns) int32    s_ref: (1, Ns, M)    q_ref: (1, 1, Lq, M)
    o_ref  : (1, 1, MAX_TAG+1, Lq)
      o[.., label, t] = max(-10000, max_{s: tag[s]==label} <q_t, S_s>)
    """
    q = q_ref[0][0]                                                        # (Lq, M)
    s = s_ref[0]                                                           # (Ns, M)
    tag = tag_ref[0]                                                       # (1, Ns)
    # contract last dims directly -- no explicit transpose of S
    dist = lax.dot_general(q, s, dimension_numbers=(((1,), (1,)), ((), ())),
                           preferred_element_type=jnp.float32)             # (Lq, Ns)
    rows = []
    for label in range(MAX_TAG + 1):
        masked = jnp.where(tag == label, dist, jnp.float32(NEG_FILL))      # (Lq, Ns)
        rows.append(jnp.max(masked, axis=-1))                              # (Lq,)
    o_ref[0, 0] = jnp.stack(rows, axis=0)                                  # (T, Lq)


# --------------------------- pallas_call wrappers -------------------------
def fused_shaking_map(seq, w_cat, b_cat, w_map, b_map):
    """seq: (B, L, H) -> mapped handshaking hidden (B, L*L, 3M padded)."""
    B, L, H = seq.shape
    P = L * L
    MP = w_map.shape[1]
    return pl.pallas_call(
        fused_shaking_map_kernel,
        out_shape=jax.ShapeDtypeStruct((B, P, MP), jnp.float32),
        grid=(B,),
        in_specs=[
            pl.BlockSpec((1, L, H), lambda b: (b, 0, 0)),
            pl.BlockSpec((H, 2 * H), lambda b: (0, 0)),
            pl.BlockSpec((1, H), lambda b: (0, 0)),
            pl.BlockSpec((H, MP), lambda b: (0, 0)),
            pl.BlockSpec((1, MP), lambda b: (0, 0)),
        ],
        out_specs=pl.BlockSpec((1, P, MP), lambda b: (b, 0, 0)),
        compiler_params=pltpu.CompilerParams(dimension_semantics=("parallel",)),
    )(seq, w_cat, b_cat, w_map, b_map)


def fused_nearest_dist(S_all, tag_all, Q_all):
    """S_all: (3, Ns, M), tag_all: (3, 1, Ns) int32, Q_all: (3, Qn, Lq, M)
       -> (3, Qn, MAX_TAG+1, Lq)."""
    Nn, Ns, M = S_all.shape
    _, Qn, Lq, _ = Q_all.shape
    T = MAX_TAG + 1
    return pl.pallas_call(
        fused_nearest_dist_kernel,
        out_shape=jax.ShapeDtypeStruct((Nn, Qn, T, Lq), jnp.float32),
        grid=(Nn, Qn),
        in_specs=[
            pl.BlockSpec((1, 1, Ns), lambda n, q: (n, 0, 0)),
            pl.BlockSpec((1, Ns, M), lambda n, q: (n, 0, 0)),    # resident across q
            pl.BlockSpec((1, 1, Lq, M), lambda n, q: (n, q, 0, 0)),
        ],
        out_specs=pl.BlockSpec((1, 1, T, Lq), lambda n, q: (n, q, 0, 0)),
        compiler_params=pltpu.CompilerParams(
            dimension_semantics=("parallel", "parallel")),
    )(tag_all, S_all, Q_all)


# ------------------------------ model glue --------------------------------
def init_params(key):
    ks = jax.random.split(key, 8)
    H, M = HIDDEN, MAP_HIDDEN
    emb = jax.random.normal(ks[0], (VOCAB, H), jnp.float32) * 0.1
    # combine_fc: Linear(2H -> H); stored pre-transposed as (H, 2H) = [W1 | W2]
    hs_w = jax.random.normal(ks[1], (H, 2 * H), jnp.float32) * (1.0 / jnp.sqrt(2.0 * H))
    hs_b = jnp.zeros((1, H), jnp.float32)
    # ent/head/tail map_fc stacked into one (H, 3M) matrix, zero-padded to 128 lanes
    parts = [
        jax.random.normal(ks[2 + i], (H, M), jnp.float32) * (1.0 / jnp.sqrt(float(H)))
        for i in range(3)
    ]
    map_w = jnp.pad(jnp.concatenate(parts, axis=1), ((0, 0), (0, MAP_PAD - 3 * M)))
    map_b = jnp.zeros((1, MAP_PAD), jnp.float32)
    return {"emb": emb, "hs_w": hs_w, "hs_b": hs_b, "map_w": map_w, "map_b": map_b}


def encode(params, src_ids, mask_ids, seg_ids):
    # TODO(synk): deterministic stand-in for the external BERT encoder.
    del mask_ids, seg_ids
    return params["emb"][src_ids]  # (B, S, H)


def few_tplinker_forward(params, support, query):
    slice_start = LABEL_MAX_LEN + 2
    M, T = MAP_HIDDEN, MAX_TAG + 1

    sup_emb = encode(params, support["src_ids"], support["mask_ids"],
                     support["seg_ids"])[:, slice_start:, :]
    qry_emb = encode(params, query["src_ids"], query["mask_ids"],
                     query["seg_ids"])[:, slice_start:, :]
    sup_batch = sup_emb.shape[0]

    # one fused kernel for handshaking + all three map projections, support & query together
    seq_all = jnp.concatenate([sup_emb, qry_emb], axis=0)            # (Bs+Bq, L, H)
    mapped = fused_shaking_map(seq_all, params["hs_w"], params["hs_b"],
                               params["map_w"], params["map_b"])     # (Bs+Bq, L*L, MAP_PAD)
    sup_mapped = mapped[:sup_batch]
    qry_mapped = mapped[sup_batch:]

    logits_chunks = [[] for _ in range(3)]
    cur_s, cur_q = 0, 0
    for ep, s_num in enumerate(support["samples_num"]):
        q_num = query["samples_num"][ep]
        # stack ent/head/tail along a leading "name" axis for one fused nearest-dist call
        S_all = jnp.stack(
            [sup_mapped[cur_s:cur_s + s_num, :, i * M:(i + 1) * M].reshape(-1, M)
             for i in range(3)], axis=0)                             # (3, Ns, M)
        tag_all = (support["tags"][:, cur_s:cur_s + s_num]
                   .reshape(3, 1, -1).astype(jnp.int32))             # (3, 1, Ns)
        Q_all = jnp.stack(
            [qry_mapped[cur_q:cur_q + q_num, :, i * M:(i + 1) * M]
             for i in range(3)], axis=0)                             # (3, q_num, Lq, M)
        out = fused_nearest_dist(S_all, tag_all, Q_all)              # (3, q_num, T, Lq)
        for i in range(3):
            logits_chunks[i].append(out[i])
        cur_s += s_num
        cur_q += q_num

    # keep the lane-dense kernel layout (q, T, L*L) for the argmax, then one tiny
    # transpose only to restore the PyTorch return layout (q, L*L, T).
    logits_tl = [jnp.concatenate(c, axis=0) for c in logits_chunks]  # (Qn, T, L*L)
    pred = [jnp.argmax(l, axis=1) for l in logits_tl]                # (Qn, L*L)
    logits = [jnp.transpose(l, (0, 2, 1)) for l in logits_tl]        # (Qn, L*L, T)
    return logits, pred


# --------------------------------- main ------------------------------------
if __name__ == "__main__":
    key = jax.random.PRNGKey(0)
    k_par, k_sup, k_qry, k_tag = jax.random.split(key, 4)
    params = init_params(k_par)

    sup_batch, qry_batch = 2, 2
    L = SEQ
    support = {
        "src_ids": jax.random.randint(k_sup, (sup_batch, TOTAL_SEQ), 0, VOCAB),
        "mask_ids": jnp.ones((sup_batch, TOTAL_SEQ), jnp.int32),
        "seg_ids": jnp.zeros((sup_batch, TOTAL_SEQ), jnp.int32),
        "samples_num": [sup_batch],  # one episode
        "tags": jax.random.randint(k_tag, (3, sup_batch, L * L), 0, MAX_TAG + 1),
    }
    query = {
        "src_ids": jax.random.randint(k_qry, (qry_batch, TOTAL_SEQ), 0, VOCAB),
        "mask_ids": jnp.ones((qry_batch, TOTAL_SEQ), jnp.int32),
        "seg_ids": jnp.zeros((qry_batch, TOTAL_SEQ), jnp.int32),
        "samples_num": [qry_batch],
    }

    logits, pred = few_tplinker_forward(params, support, query)
    jax.block_until_ready((logits, pred))

    assert logits[0].shape == (qry_batch, L * L, MAX_TAG + 1)
    assert pred[0].shape == (qry_batch, L * L)
    print("KERNEL_OK")
</pallas_src>

<mosaic_0001>
module attributes {stable_mosaic.version = 11 : i64} {
  func.func @fused_shaking_map_kernel(%arg0: i32, %arg1: memref<1x8x32xf32, #tpu.memory_space<vmem>>, %arg2: memref<32x64xf32, #tpu.memory_space<vmem>>, %arg3: memref<1x32xf32, #tpu.memory_space<vmem>>, %arg4: memref<32x128xf32, #tpu.memory_space<vmem>>, %arg5: memref<1x128xf32, #tpu.memory_space<vmem>>, %arg6: memref<1x64x128xf32, #tpu.memory_space<vmem>>) attributes {dimension_semantics = [#tpu.dimension_semantics<parallel>], iteration_bounds = array<i64: 4>, scalar_prefetch = 0 : i64, scratch_operands = 0 : i64, tpu.core_type = #tpu.core_type<tc>, window_params = [{transform_indices = @transform_0, window_bounds = array<i64: 1, 8, 32>}, {pipeline_mode = #tpu.pipeline_mode<synchronous>, transform_indices = @transform_1, window_bounds = array<i64: 32, 64>}, {pipeline_mode = #tpu.pipeline_mode<synchronous>, transform_indices = @transform_2, window_bounds = array<i64: 1, 32>}, {pipeline_mode = #tpu.pipeline_mode<synchronous>, transform_indices = @transform_3, window_bounds = array<i64: 32, 128>}, {pipeline_mode = #tpu.pipeline_mode<synchronous>, transform_indices = @transform_4, window_bounds = array<i64: 1, 128>}, {transform_indices = @transform_5, window_bounds = array<i64: 1, 64, 128>}]} {
    %c0 = arith.constant 0 : index
    %c0_0 = arith.constant 0 : index
    %c0_1 = arith.constant 0 : index
    %0 = vector.load %arg1[%c0, %c0_0, %c0_1] : memref<1x8x32xf32, #tpu.memory_space<vmem>>, vector<1x8x32xf32>
    %1 = vector.shape_cast %0 : vector<1x8x32xf32> to vector<8x32xf32>
    %c0_2 = arith.constant 0 : index
    %c0_3 = arith.constant 0 : index
    %2 = vector.load %arg2[%c0_2, %c0_3] : memref<32x64xf32, #tpu.memory_space<vmem>>, vector<32x64xf32>
    %cst = arith.constant dense<0.000000e+00> : vector<8x64xf32>
    %3 = tpu.matmul %1, %2, %cst {dimension_numbers = #tpu.dot_dimension_numbers<[1], [0], [0], [1], [0, 0, 1, 1], [], []>} : vector<8x32xf32>, vector<32x64xf32>, vector<8x64xf32> -> vector<8x64xf32>
    %4 = vector.extract_strided_slice %3 {offsets = [0, 0], sizes = [8, 32], strides = [1, 1]} : vector<8x64xf32> to vector<8x32xf32>
    %c0_4 = arith.constant 0 : index
    %c0_5 = arith.constant 0 : index
    %5 = vector.load %arg3[%c0_4, %c0_5] : memref<1x32xf32, #tpu.memory_space<vmem>>, vector<1x32xf32>
    %6 = vector.broadcast %5 : vector<1x32xf32> to vector<8x32xf32>
    %7 = arith.addf %4, %6 : vector<8x32xf32>
    %8 = vector.extract_strided_slice %3 {offsets = [0, 32], sizes = [8, 32], strides = [1, 1]} : vector<8x64xf32> to vector<8x32xf32>
    %9 = vector.shape_cast %7 : vector<8x32xf32> to vector<8x1x32xf32>
    %10 = vector.shape_cast %8 : vector<8x32xf32> to vector<1x8x32xf32>
    %11 = vector.broadcast %9 : vector<8x1x32xf32> to vector<8x8x32xf32>
    %12 = vector.broadcast %10 : vector<1x8x32xf32> to vector<8x8x32xf32>
    %13 = arith.addf %11, %12 : vector<8x8x32xf32>
    %14 = math.tanh %13 : vector<8x8x32xf32>
    %15 = vector.shape_cast %14 : vector<8x8x32xf32> to vector<64x32xf32>
    %c0_6 = arith.constant 0 : index
    %c0_7 = arith.constant 0 : index
    %16 = vector.load %arg4[%c0_6, %c0_7] : memref<32x128xf32, #tpu.memory_space<vmem>>, vector<32x128xf32>
    %cst_8 = arith.constant dense<0.000000e+00> : vector<64x128xf32>
    %17 = tpu.matmul %15, %16, %cst_8 {dimension_numbers = #tpu.dot_dimension_numbers<[1], [0], [0], [1], [0, 0, 1, 1], [], []>} : vector<64x32xf32>, vector<32x128xf32>, vector<64x128xf32> -> vector<64x128xf32>
    %c0_9 = arith.constant 0 : index
    %c0_10 = arith.constant 0 : index
    %18 = vector.load %arg5[%c0_9, %c0_10] : memref<1x128xf32, #tpu.memory_space<vmem>>, vector<1x128xf32>
    %19 = vector.broadcast %18 : vector<1x128xf32> to vector<64x128xf32>
    %20 = arith.addf %17, %19 : vector<64x128xf32>
    %c0_11 = arith.constant 0 : index
    %c0_12 = arith.constant 0 : index
    %c0_13 = arith.constant 0 : index
    %21 = vector.load %arg6[%c0_11, %c0_12, %c0_13] : memref<1x64x128xf32, #tpu.memory_space<vmem>>, vector<1x64x128xf32>
    %22 = vector.shape_cast %21 : vector<1x64x128xf32> to vector<64x128xf32>
    %23 = vector.shape_cast %20 : vector<64x128xf32> to vector<1x64x128xf32>
    tpu.vector_store %arg6[%c0_11, %c0_12, %c0_13], %23 {strides = array<i32>} : memref<1x64x128xf32, #tpu.memory_space<vmem>>, vector<1x64x128xf32>,
    return
  }
  func.func @transform_0(%arg0: i32) -> (i32, i32, i32) {
    %c0_i32 = arith.constant 0 : i32
    %c0_i32_0 = arith.constant 0 : i32
    %c0_i32_1 = arith.constant 0 : i32
    return %arg0, %c0_i32, %c0_i32_0 : i32, i32, i32
  }
  func.func @transform_1(%arg0: i32) -> (i32, i32) {
    %c0_i32 = arith.constant 0 : i32
    %c0_i32_0 = arith.constant 0 : i32
    %c0_i32_1 = arith.constant 0 : i32
    return %c0_i32, %c0_i32_0 : i32, i32
  }
  func.func @transform_2(%arg0: i32) -> (i32, i32) {
    %c0_i32 = arith.constant 0 : i32
    %c0_i32_0 = arith.constant 0 : i32
    %c0_i32_1 = arith.constant 0 : i32
    return %c0_i32, %c0_i32_0 : i32, i32
  }
  func.func @transform_3(%arg0: i32) -> (i32, i32) {
    %c0_i32 = arith.constant 0 : i32
    %c0_i32_0 = arith.constant 0 : i32
    %c0_i32_1 = arith.constant 0 : i32
    return %c0_i32, %c0_i32_0 : i32, i32
  }
  func.func @transform_4(%arg0: i32) -> (i32, i32) {
    %c0_i32 = arith.constant 0 : i32
    %c0_i32_0 = arith.constant 0 : i32
    %c0_i32_1 = arith.constant 0 : i32
    return %c0_i32, %c0_i32_0 : i32, i32
  }
  func.func @transform_5(%arg0: i32) -> (i32, i32, i32) {
    %c0_i32 = arith.constant 0 : i32
    %c0_i32_0 = arith.constant 0 : i32
    %c0_i32_1 = arith.constant 0 : i32
    return %arg0, %c0_i32, %c0_i32_0 : i32, i32, i32
  }
}

</mosaic_0001>

<bundles_post_ra>
// kernel: tpu_custom_call.1
= control target key start
LH: loop header
LB: loop body
LE: loop exit
PB: predicated region body
PF: predicated region fallthrough
CT: control target
= control target key end

     0   :  { %10 = vsyncpa [#allocation3], 0  ;;  %s1025_s0 = inlined_call_operand.hbm [shape: f32[4,8,32], index: 0, kind: input, shape index: {}]   ;;  %s1026_s1 = inlined_call_operand.hbm [shape: f32[32,64], index: 1, kind: input, shape index: {}]   ;;  %s1027_s2 = inlined_call_operand.vmem [shape: f32[1,32], index: 2, kind: input, shape index: {}]   ;;  %s1028_s3 = inlined_call_operand.hbm [shape: f32[32,128], index: 3, kind: input, shape index: {}]   ;;  %s1029_s4 = inlined_call_operand.vmem [shape: f32[1,128], index: 4, kind: input, shape index: {}]   ;;  %s1030_s5 = inlined_call_operand.hbm [shape: f32[4,64,128], index: 5, kind: output, shape index: {}]  }
   0x1   :  { %12 = vsyncpa [#allocation3 + $0x1], 0 }
   0x2   :  { %13 = vsyncpa [#allocation6], 0 }
   0x3   :  { %14 = vsyncpa [#allocation4], 0 }
   0x4   :  { %16 = vsyncpa [#allocation4 + $0x1], 0  ;;  %s866_s18 = smov 0   ;;  %s868_s19 = smov 0  }
   0x5   :  { %s870_s20 = smov 0   ;;  %s872_s21 = smov 0  }
   0x6 LB: > { %s174_s24 = sshll.u32 %s1026_s1, 4  ;;  %s890_s25 = sadd.s32 4294967295, %s827_s21   ;;  %s827_s21 = sphi %s872_s21, %s1040_s21   ;;  %s823_s20 = sphi %s870_s20, %s1039_s20   ;;  %s819_s19 = sphi %s868_s19, %s1038_s19   ;;  %s815_s18 = sphi %s866_s18, %s1037_s18   ;;  %s175_s24 = int_to_ptr.hbm [resolvable:$true] %s174_s24 }
   0x7   : > { %p543_p0 = scmp.ge.s32.totalorder %s827_s21, 1  ;;  %p43_p1 = scmp.eq.s32.totalorder %s890_s25, 0 }
   0x8   : > { %p163_p2 = scmp.lt.s32.totalorder %s827_s21, 5  ;;  %s829_s27 = smov [#allocation5]  }
   0x9   : > { %s176_s28 = sshll.u32 %s829_s27, 4  ;;  %s191_s6 = sshll.u32 %s1028_s3, 4  ;;  %s177_s28 = int_to_ptr.vmem [resolvable:$true] %s176_s28  ;;  %s192_s6 = int_to_ptr.hbm [resolvable:$true] %s191_s6 }
   0xa   : > { %p895_p3 = pnand %p543_p0, %p163_p2  ;;  %s830_s7 = smov [#allocation7]  }
   0xb   : > { %s193_s8 = sshll.u32 %s830_s7, 4  ;;  %s831_s9 = smov 128   ;;  %s194_s8 = int_to_ptr.vmem [resolvable:$true] %s193_s8 }
   0xc   : > { %p589_p4 = pneg %p895_p3  ;;  %s832_s10 = smov 8  }
   0xd   : > { %s542_s11 = sadd.s32 4294967294, %s827_s21   ;;  %s908_s12 = sadd.s32 1, %s827_s21  }
   0xe   : > { %p590_p5 = pnand %p589_p4, %p43_p1  ;;  %s26_s13 = ssub.s32 %s827_s21, %s908_s12 }
   0xf   : > { %s29_s14 = sadd.s32 1, %s823_s20  ;;  %p27_p6 = scmp.eq.s32.totalorder %s26_s13, 0 }
  0x10   : > { %592 = dma.hbm_to_vmem [thread:$0]  (!%p590_p5), %s175_s24, 512, %s177_s28, [#allocation6], %s831_s9, %s831_s9, %s832_s10  }
  0x11   : > { %595 = dma.hbm_to_vmem [thread:$0]  (!%p590_p5), %s192_s6, 512, %s194_s8, [#allocation6], %s831_s9, %s831_s9, %s832_s10  }
  0x12   : > { %p36_p7 = scmp.ne.s32.totalorder %s823_s20, %s819_s19  ;;  %p37_p8 = scmp.eq.s32.totalorder %s827_s21, 0 }
  0x13   : > { %p42_p9 = scmp.ne.s32.totalorder %s819_s19, %s815_s18  ;;  %p150_p12 = scmp.eq.s32.totalorder %s890_s25, 3 }
  0x14   : > { %s919_s15 = scalar_select %p27_p6, %s823_s20, %s29_s14  }
  0x15   : > { %p921_p10 = por %p37_p8, %p36_p7  ;;  %p927_p11 = por %p43_p1, %p42_p9 }
  0x16   : > { %p156_p13 = scmp.eq.s32.totalorder %s542_s11, 3  ;;  %p606_p0 = scmp.lt.s32.totalorder %s827_s21, 4 }
  0x17   : > { %s210_s22 = sand.u32 1, %s823_s20   ;;  %p934_p2 = por %p150_p12, %p36_p7 }
  0x18   : > { %p938_p4 = por %p156_p13, %p42_p9  ;;  %s547_s27 = sshll.u32 %s210_s22, 3 }
  0x19   : > { %s548_s28 = sshll.u32 %s827_s21, 3  ;;  %s214_s7 = scalar_lea.vmem [#allocation2], %s547_s27 }
  0x1a   : > { %s218_s6 = scalar_lea.hbm %s1025_s0, %s548_s28  ;;  %s222_s8 = sshll.u32 %s214_s7, 4  ;;  %s223_s8 = int_to_ptr.vmem [resolvable:$true] %s222_s8 }
  0x1b   : > { %s220_s9 = sshll.u32 %s218_s6, 4  ;;  %p948_p5 = pnand %p606_p0, %p921_p10  ;;  %s221_s9 = int_to_ptr.hbm [resolvable:$true] %s220_s9 }
  0x1c   : > { %s211_s11 = scalar_lea.sflag [#allocation3], %s210_s22  ;;  %s727_s13 = sshra.s32 %s221_s9, 4  ;;  %s728_s13 = int_to_ptr.hbm [resolvable:$true] %s727_s13 }
  0x1d   : > { %s729_s14 = scalar_lea.hbm %s728_s13, 8  ;;  %p731_p7 = pneg %p948_p5 }
  0x1e   : > { %p730_p6 = scmp.ne.s32.totalorder %s728_s13, %s729_s14  ;;  %s734_s29 = scalar_lea.hbm %s1025_s0, 32 }
  0x1f   : > { %p735_p10 = scmp.lt.s32.totalorder %s728_s13, %s1025_s0  ;;  %p736_p12 = scmp.lt.s32.totalorder %s734_s29, %s729_s14 }
  0x20   : > { %p732_p8 = pnand %p731_p7, %p730_p6 }
  0x21   : > { %p737_p13 = por %p736_p12, %p735_p10 }
  0x22   : > { %p733_p9 = pneg %p732_p8 }
  0x24   : > { %p738_p0 = pnand %p737_p13, %p733_p9 }
  0x26   : > { %741 = shalt.err (!%p738_p0)
}
  0x27   : > { %599 = dma.hbm_to_vmem [thread:$0]  (!%p948_p5), %s221_s9, 128, %s223_s8, %s211_s11  }
  0x28   : > { %231 = sbr.rel (%p895_p3) target bundleno = 462 (0x1ce), region = 40  ;;  %s965_s22 = sand.u32 (!%p895_p3), 1, %s819_s19  }
  0x29   : > { %s550_s6 = sshll.u32 (!%p895_p3), %s965_s22, 3  ;;  %s234_s7 = scalar_lea.sflag (!%p895_p3), [#allocation3], %s965_s22 }
  0x2a   : > { %s237_s27 = scalar_lea.vmem (!%p895_p3), [#allocation2], %s550_s6 }
  0x2d   : > { %802 = dma.done.wait (%p927_p11), %s234_s7, 128  }
  0x2e   : > { %804 = vsyncadd (%p927_p11), %s234_s7, 4294967168 }
  0x2f   : > { %806 = dma.done.wait (%p43_p1), [#allocation6], 1024  }
  0x30   : > { %808 = vsyncadd (%p43_p1), [#allocation6], 4294966272  ;;  %v279_v0 = vld [vmem:[#allocation5 + $0x18] sm:$0xff]  ;;  %v278_v1 = vld [vmem:[#allocation5 + $0x10] sm:$0xff]  ;;  %vm280_vm0 = vcmask 261120   ;;  %s833_s26 = smov 96  }
  0x31   : > { %296 = vmatpush.msra.mxu0 %v279_v0  ;;  %v277_v2 = vld [vmem:[#allocation5 + $0x8] sm:$0xff]  ;;  %v276_v3 = vld [vmem:[#allocation5] sm:$0xff]  ;;  %v275_v4 = vld [vmem:[%s237_s27] sm:$0xff]  ;;  %s553_s9 = sshll.u32 %s965_s22, 6  ;;  %s568_s14 = sshll.u32 %s890_s25, 6 }
  0x32   : > { %v356_v6 = vld [vmem:[#allocation7 + $0x18] sm:$0xff]  ;;  %v355_v7 = vld [vmem:[#allocation7 + $0x10] sm:$0xff]  ;;  %v354_v8 = vld [vmem:[#allocation7 + $0x8] sm:$0xff]  ;;  %s274_s13 = scalar_lea.vmem [#allocation8], %s553_s9  ;;  %s446_s30 = scalar_lea.hbm %s1030_s5, %s568_s14 }
  0x33   : > { %297 = vmatpush.msra.mxu0 %v278_v1  ;;  %397 = vmatpush.msra.mxu1 %v356_v6  ;;  %v353_v9 = vld [vmem:[#allocation7] sm:$0xff]  ;;  %v649_v10 = vld [vmem:[%s1027_s2] ss:$0 sm:$0xff]  ;;  %s447_s16 = sshll.u32 %s274_s13, 4  ;;  %s449_s6 = sshll.u32 %s446_s30, 4  ;;  %s448_s16 = int_to_ptr.vmem [resolvable:$true] %s447_s16  ;;  %s450_s6 = int_to_ptr.hbm [resolvable:$true] %s449_s6 }
  0x34   : > { %569 = vmatpush.msra.mxu2 %v356_v6  ;;  %570 = vmatpush.msra.mxu3 %v356_v6  ;;  %v650_v44 = vld [vmem:[%s1029_s4] ss:$0 sm:$0xff]  ;;  %s435_s7 = scalar_lea.sflag [#allocation4], %s965_s22  ;;  %s771_s25 = sshra.s32 %s450_s6, 4  ;;  %s772_s25 = int_to_ptr.hbm [resolvable:$true] %s771_s25 }
  0x35   : > { %298 = vmatpush.msra.mxu0 %v277_v2  ;;  %398 = vmatpush.msra.mxu1 %v355_v7  ;;  %s773_s27 = scalar_lea.hbm %s772_s25, 64  ;;  %s777_s8 = scalar_lea.hbm %s1030_s5, 256 }
  0x36   : > { %571 = vmatpush.msra.mxu2 %v355_v7  ;;  %572 = vmatpush.msra.mxu3 %v355_v7  ;;  %p774_p1 = scmp.ne.s32.totalorder %s772_s25, %s773_s27  ;;  %p778_p5 = scmp.lt.s32.totalorder %s772_s25, %s1030_s5 }
  0x37   : > { %299 = vmatpush.msra.mxu0 %v276_v3  ;;  %399 = vmatpush.msra.mxu1 %v354_v8  ;;  %p779_p6 = scmp.lt.s32.totalorder %s777_s8, %s773_s27 }
  0x38   : > { %554 = vmatmul.msk.f32.vlgmr.msra.gmra.mxu0 %vm280_vm0, %v275_v4  ;;  %573 = vmatpush.msra.mxu2 %v354_v8  ;;  %p775_p3 = pnand %p774_p1, %p934_p2 }
  0x39   : > { %574 = vmatpush.msra.mxu3 %v354_v8  ;;  %400 = vmatpush.msra.mxu1 %v353_v9  ;;  %p780_p7 = por %p779_p6, %p778_p5 }
  0x3a   : > { %575 = vmatpush.msra.mxu2 %v353_v9  ;;  %p776_p11 = pneg %p775_p3 }
  0x3b   : > { %576 = vmatpush.msra.mxu3 %v353_v9 }
  0x3c   : > { %p781_p8 = pnand %p780_p7, %p776_p11 }
  0xb5   : > { %v301_v5 = vpop.f32.mrf.mxu0 }
  0xb6   : > { %334 = vrot.lane.b32.xlu0 %v301_v5, %s833_s26  ;;  %v308_v11 = vadd.f32 %v649_v10, %v301_v5 }
  0xb8   : > { %v311_v12 = vrot.slane %v308_v11, 2  ;;  %v314_v13 = vrot.slane %v308_v11, 5  ;;  %v317_v14 = vperm.slane %v308_v11, 0  ;;  %v310_v18 = vrot.slane %v308_v11, 1 }
  0xb9   : > { %v312_v21 = vrot.slane %v308_v11, 3  ;;  %v315_v23 = vrot.slane %v308_v11, 6  ;;  %v313_v32 = vrot.slane %v308_v11, 4  ;;  %v316_v34 = vrot.slane %v308_v11, 7 }
  0xba   : > { %v319_v15 = vperm.slane %v311_v12, 0  ;;  %v322_v16 = vperm.slane %v314_v13, 0  ;;  %v318_v24 = vperm.slane %v310_v18, 0 }
  0xbb   : > { %v320_v25 = vperm.slane %v312_v21, 0  ;;  %v323_v26 = vperm.slane %v315_v23, 0  ;;  %v321_v35 = vperm.slane %v313_v32, 0  ;;  %v324_v36 = vperm.slane %v316_v34, 0 }
 0x128   : > { %v335_v17 = vpop.permute.xlu0 %334 }
 0x129   : > { %v337_v19 = vadd.f32 %v335_v17, %v317_v14  ;;  %v339_v20 = vadd.f32 %v335_v17, %v319_v15  ;;  %v342_v22 = vadd.f32 %v335_v17, %v322_v16  ;;  %v338_v27 = vadd.f32 %v335_v17, %v318_v24 }
 0x12a   : > { %v340_v28 = vadd.f32 %v335_v17, %v320_v25  ;;  %v343_v30 = vadd.f32 %v335_v17, %v323_v26  ;;  %v341_v37 = vadd.f32 %v335_v17, %v321_v35  ;;  %v344_v39 = vadd.f32 %v335_v17, %v324_v36 }
 0x12b   : > { %651 = vtanh.f32 %v337_v19 }
 0x12c   : > { %653 = vtanh.f32 %v339_v20 }
 0x12d   : > { %655 = vtanh.f32 %v342_v22 }
 0x12e   : > { %657 = vtanh.f32 %v338_v27 }
 0x12f   : > { %659 = vtanh.f32 %v340_v28 }
 0x130   : > { %661 = vtanh.f32 %v343_v30 }
 0x131   : > { %v652_v29 = vpop.eup %651  ;;  %663 = vtanh.f32 %v341_v37 }
 0x132   : > { %v654_v31 = vpop.eup %653  ;;  %555 = vmatmul.msk.f32.vlgmr.msra.gmra.mxu1 %vm280_vm0, %v652_v29  ;;  %665 = vtanh.f32 %v344_v39 }
 0x133   : > { %v656_v33 = vpop.eup %655  ;;  %557 = vmatmul.msk.f32.vlgmr.msra.gmra.mxu2 %vm280_vm0, %v654_v31 }
 0x134   : > { %560 = vmatmul.msk.f32.vlgmr.msra.gmra.mxu3 %vm280_vm0, %v656_v33  ;;  %v658_v38 = vpop.eup %657 }
 0x135   : > { %v660_v40 = vpop.eup %659 }
 0x136   : > { %v662_v41 = vpop.eup %661 }
 0x137   : > { %v664_v42 = vpop.eup %663 }
 0x138   : > { %v666_v43 = vpop.eup %665 }
 0x13a   : > { %556 = vmatmul.msk.f32.gmra.mxu1 %vm280_vm0, %v658_v38 }
 0x13b   : > { %558 = vmatmul.msk.f32.gmra.mxu2 %vm280_vm0, %v660_v40 }
 0x13c   : > { %561 = vmatmul.msk.f32.gmra.mxu3 %vm280_vm0, %v662_v41 }
 0x143   : > { %559 = vmatmul.msk.f32.gmra.mxu2 %vm280_vm0, %v664_v42 }
 0x144   : > { %562 = vmatmul.msk.f32.gmra.mxu3 %vm280_vm0, %v666_v43 }
 0x1af   : > { %v402_v45 = vpop.f32.mrf.mxu1 }
 0x1b0   : > { %v403_v46 = vadd.f32 %v650_v44, %v402_v45 }
 0x1b2   : > { %426 = vst [vmem:[%s274_s13] sm:$0xff] %v403_v46 }
 0x1b6   : > { %v408_v47 = vpop.f32.mrf.mxu2 }
 0x1b7   : > { %v409_v48 = vadd.f32 %v650_v44, %v408_v47  ;;  %v417_v49 = vpop.f32.mrf.mxu3  ;;  %v405_v50 = vpop.f32.mrf.mxu1 }
 0x1b8   : > { %v418_v51 = vadd.f32 %v650_v44, %v417_v49  ;;  %v406_v52 = vadd.f32 %v650_v44, %v405_v50 }
 0x1b9   : > { %428 = vst [vmem:[%s274_s13 + $0x10] sm:$0xff] %v409_v48 }
 0x1ba   : > { %431 = vst [vmem:[%s274_s13 + $0x28] sm:$0xff] %v418_v51 }
 0x1bb   : > { %427 = vst [vmem:[%s274_s13 + $0x8] sm:$0xff] %v406_v52 }
 0x1be   : > { %v411_v53 = vpop.f32.mrf.mxu2 }
 0x1bf   : > { %v412_v54 = vadd.f32 %v650_v44, %v411_v53  ;;  %v420_v55 = vpop.f32.mrf.mxu3 }
 0x1c0   : > { %v421_v56 = vadd.f32 %v650_v44, %v420_v55 }
 0x1c1   : > { %429 = vst [vmem:[%s274_s13 + $0x18] sm:$0xff] %v412_v54 }
 0x1c2   : > { %432 = vst [vmem:[%s274_s13 + $0x30] sm:$0xff] %v421_v56 }
 0x1c6   : > { %v414_v57 = vpop.f32.mrf.mxu2 }
 0x1c7   : > { %v415_v58 = vadd.f32 %v650_v44, %v414_v57  ;;  %v423_v59 = vpop.f32.mrf.mxu3 }
 0x1c8   : > { %v424_v60 = vadd.f32 %v650_v44, %v423_v59 }
 0x1c9   : > { %430 = vst [vmem:[%s274_s13 + $0x20] sm:$0xff] %v415_v58 }
 0x1ca   : > { %433 = vst [vmem:[%s274_s13 + $0x38] sm:$0xff] %v424_v60 }
 0x1cb   : > { %784 = shalt.err (!%p781_p8)
}
 0x1cc   : > { %s834_s22 = smov 128   ;;  %s835_s11 = smov 8  }
 0x1cd   : > { %587 = dma.vmem_to_hbm [thread:$0]  (%p934_p2), %s448_s16, 1024, %s450_s6, %s435_s7, %s834_s22, %s834_s22, %s835_s11  }
 0x1ce PF: > { %p609_p9 = scmp.ge.s32.totalorder %s827_s21, 2  ;;  %s464_s13 = sand.u32 1, %s815_s18  }
 0x1cf   : > { %s465_s14 = scalar_lea.sflag [#allocation4], %s464_s13 }
 0x1d0   : > { %p601_p10 = pnand %p609_p9, %p938_p4 }
 0x1d2   : > { %p602_p12 = pneg %p601_p10 }
 0x1d4   : > { %810 = dma.done.wait (%p602_p12), %s465_s14, 1024  }
 0x1d5   : > { %812 = vsyncadd (%p602_p12), %s465_s14, 4294966272  ;;  %p19_p13 = scmp.ge.s32.totalorder %s908_s12, 6   ;;  %s1037_s18 = smov %s819_s19 }
 0x1d6   : > { %s1038_s19 = smov %s823_s20  ;;  %s1039_s20 = smov %s919_s15 }
 0x1d7   : > { %s1040_s21 = smov %s908_s12  ;;  %21 = sbr.rel (!%p19_p13) target bundleno = 6 (0x6), region = 93 }
 0x1dc   :  { %471 = vsyncpa [#allocation3], 1 }
 0x1dd   :  { %473 = vsyncpa [#allocation3 + $0x1], 1 }
 0x1de   :  { %474 = vsyncpa [#allocation6], 1 }
 0x1df   :  { %475 = vsyncpa [#allocation4], 1 }
 0x1e0   :  { %477 = vsyncpa [#allocation4 + $0x1], 1 }

</bundles_post_ra>
